<compile_context>
chip_gen: v5e
topology: v5e:2x2
jax: 0.10.0
libtpu: 0.0.40
codegen_flags: <defaults>
</compile_context>

<pallas_src>
import functools

import jax
import jax.numpy as jnp
from jax.experimental import pallas as pl
from jax.experimental.pallas import tpu as pltpu

H1 = 32
H2 = H1 * 2  # 64

# Large streaming tile (sweepable 1024-8192); shrunk automatically for small batches.
DEFAULT_TILE_B = 2048


def _round_up(x, m):
    return ((x + m - 1) // m) * m


def _critic_kernel(s_ref, a_ref,
                   w1s_ref, w1a_ref, b1_ref,
                   w2_ref, b2_ref,
                   w3_ref, b3_ref,
                   w4_ref, b4_ref,
                   o_ref):
    # Layer 1: concat(state, action) @ W1 + b1  ==  state @ W1_s + action @ W1_a + b1
    h = (jnp.dot(s_ref[...], w1s_ref[...], preferred_element_type=jnp.float32)
         + jnp.dot(a_ref[...], w1a_ref[...], preferred_element_type=jnp.float32)
         + b1_ref[...])
    h = jnp.maximum(h, 0.0)
    # Layer 2: Linear(H2 -> H2) + ReLU
    h = jnp.maximum(
        jnp.dot(h, w2_ref[...], preferred_element_type=jnp.float32) + b2_ref[...], 0.0)
    # Layer 3: Linear(H2 -> H2) + ReLU
    h = jnp.maximum(
        jnp.dot(h, w3_ref[...], preferred_element_type=jnp.float32) + b3_ref[...], 0.0)
    # Output layer: Linear(H2 -> action_dim), no activation
    o_ref[...] = (jnp.dot(h, w4_ref[...], preferred_element_type=jnp.float32)
                  + b4_ref[...]).astype(o_ref.dtype)


@functools.partial(jax.jit, static_argnames=("tile_b",))
def critic_forward(state, action, params, *, tile_b=DEFAULT_TILE_B):
    """state: (B, n_states) f32, action: (B, action_dim) f32 -> (B, action_dim) f32."""
    (w1, b1), (w2, b2), (w3, b3), (w4, b4) = params
    batch, n_states = state.shape
    action_dim = action.shape[1]
    h2 = w1.shape[1]

    # Fold the concat into the kernel: split first-layer weight by input source.
    w1s = w1[:n_states]          # (n_states, H2)
    w1a = w1[n_states:]          # (action_dim, H2)

    # Batch tiling: clamp tile to the batch, keep it a multiple of 8 sublanes,
    # pad the batch so the grid divides evenly.
    tile = min(tile_b, _round_up(batch, 8))
    tile = _round_up(tile, 8)
    padded = _round_up(batch, tile)
    if padded != batch:
        state = jnp.pad(state, ((0, padded - batch), (0, 0)))
        action = jnp.pad(action, ((0, padded - batch), (0, 0)))

    grid = (padded // tile,)
    batch_map = lambda i: (i, 0)
    const_map = lambda i: (0, 0)   # weights/biases resident across grid steps

    out = pl.pallas_call(
        _critic_kernel,
        out_shape=jax.ShapeDtypeStruct((padded, action_dim), jnp.float32),
        grid=grid,
        in_specs=[
            pl.BlockSpec((tile, n_states), batch_map),     # state
            pl.BlockSpec((tile, action_dim), batch_map),   # action
            pl.BlockSpec((n_states, h2), const_map),       # w1_state
            pl.BlockSpec((action_dim, h2), const_map),     # w1_action
            pl.BlockSpec((1, h2), const_map),              # b1
            pl.BlockSpec((h2, h2), const_map),             # w2
            pl.BlockSpec((1, h2), const_map),              # b2
            pl.BlockSpec((h2, h2), const_map),             # w3
            pl.BlockSpec((1, h2), const_map),              # b3
            pl.BlockSpec((h2, action_dim), const_map),     # w4
            pl.BlockSpec((1, action_dim), const_map),      # b4
        ],
        out_specs=pl.BlockSpec((tile, action_dim), batch_map),
        compiler_params=pltpu.CompilerParams(
            dimension_semantics=("parallel",)),
    )(state, action, w1s, w1a, b1, w2, b2, w3, b3, w4, b4)

    return out[:batch]


def init_critic_params(key, n_states, action_dim, h2=H2):
    """Deterministic PyTorch-style init: U(-1/sqrt(fan_in), 1/sqrt(fan_in)).

    Weights stored as (in, out); biases as (1, out).
    """
    dims = [(n_states + action_dim, h2), (h2, h2), (h2, h2), (h2, action_dim)]
    params = []
    for (fan_in, fan_out) in dims:
        key, kw, kb = jax.random.split(key, 3)
        bound = 1.0 / jnp.sqrt(jnp.float32(fan_in))
        w = jax.random.uniform(kw, (fan_in, fan_out), jnp.float32, -bound, bound)
        b = jax.random.uniform(kb, (1, fan_out), jnp.float32, -bound, bound)
        params.append((w, b))
    return params


def critic_reference(state, action, params):
    """Plain-JAX reference for validation."""
    x = jnp.concatenate([state, action], axis=1)
    (w1, b1), (w2, b2), (w3, b3), (w4, b4) = params
    h = jnp.maximum(x @ w1 + b1, 0.0)
    h = jnp.maximum(h @ w2 + b2, 0.0)
    h = jnp.maximum(h @ w3 + b3, 0.0)
    return h @ w4 + b4


if __name__ == "__main__":
    n_states = 16
    action_dim = 4

    key = jax.random.PRNGKey(0)
    k_state, k_action, k_params = jax.random.split(key, 3)
    params = init_critic_params(k_params, n_states, action_dim, H2)

    # Small-batch check (single grid step, tile shrinks to 8).
    batch = 8
    state = jax.random.normal(k_state, (batch, n_states), jnp.float32)
    action = jax.random.normal(k_action, (batch, action_dim), jnp.float32)
    q = critic_forward(state, action, params)
    jax.block_until_ready(q)
    q_ref = critic_reference(state, action, params)
    assert q.shape == (batch, action_dim), q.shape
    assert jnp.allclose(q, q_ref, atol=1e-4, rtol=1e-4), "mismatch vs reference (small)"

    # Larger ragged batch check: exercises the batch grid, padding, and
    # the resident-weight / streaming-activation pipeline.
    batch2 = 300
    k_s2, k_a2 = jax.random.split(jax.random.PRNGKey(1))
    state2 = jax.random.normal(k_s2, (batch2, n_states), jnp.float32)
    action2 = jax.random.normal(k_a2, (batch2, action_dim), jnp.float32)
    q2 = critic_forward(state2, action2, params, tile_b=128)
    jax.block_until_ready(q2)
    q2_ref = critic_reference(state2, action2, params)
    assert q2.shape == (batch2, action_dim), q2.shape
    assert jnp.allclose(q2, q2_ref, atol=1e-4, rtol=1e-4), "mismatch vs reference (tiled)"

    print("KERNEL_OK")
</pallas_src>

<mosaic_0001>
module attributes {stable_mosaic.version = 11 : i64} {
  func.func @_critic_kernel(%arg0: i32, %arg1: memref<8x16xf32, #tpu.memory_space<vmem>>, %arg2: memref<8x4xf32, #tpu.memory_space<vmem>>, %arg3: memref<16x64xf32, #tpu.memory_space<vmem>>, %arg4: memref<4x64xf32, #tpu.memory_space<vmem>>, %arg5: memref<1x64xf32, #tpu.memory_space<vmem>>, %arg6: memref<64x64xf32, #tpu.memory_space<vmem>>, %arg7: memref<1x64xf32, #tpu.memory_space<vmem>>, %arg8: memref<64x64xf32, #tpu.memory_space<vmem>>, %arg9: memref<1x64xf32, #tpu.memory_space<vmem>>, %arg10: memref<64x4xf32, #tpu.memory_space<vmem>>, %arg11: memref<1x4xf32, #tpu.memory_space<vmem>>, %arg12: memref<8x4xf32, #tpu.memory_space<vmem>>) attributes {dimension_semantics = [#tpu.dimension_semantics<parallel>], iteration_bounds = array<i64: 1>, scalar_prefetch = 0 : i64, scratch_operands = 0 : i64, tpu.core_type = #tpu.core_type<tc>, window_params = [{transform_indices = @transform_0, window_bounds = array<i64: 8, 16>}, {transform_indices = @transform_1, window_bounds = array<i64: 8, 4>}, {pipeline_mode = #tpu.pipeline_mode<synchronous>, transform_indices = @transform_2, window_bounds = array<i64: 16, 64>}, {pipeline_mode = #tpu.pipeline_mode<synchronous>, transform_indices = @transform_3, window_bounds = array<i64: 4, 64>}, {pipeline_mode = #tpu.pipeline_mode<synchronous>, transform_indices = @transform_4, window_bounds = array<i64: 1, 64>}, {pipeline_mode = #tpu.pipeline_mode<synchronous>, transform_indices = @transform_5, window_bounds = array<i64: 64, 64>}, {pipeline_mode = #tpu.pipeline_mode<synchronous>, transform_indices = @transform_6, window_bounds = array<i64: 1, 64>}, {pipeline_mode = #tpu.pipeline_mode<synchronous>, transform_indices = @transform_7, window_bounds = array<i64: 64, 64>}, {pipeline_mode = #tpu.pipeline_mode<synchronous>, transform_indices = @transform_8, window_bounds = array<i64: 1, 64>}, {pipeline_mode = #tpu.pipeline_mode<synchronous>, transform_indices = @transform_9, window_bounds = array<i64: 64, 4>}, {pipeline_mode = #tpu.pipeline_mode<synchronous>, transform_indices = @transform_10, window_bounds = array<i64: 1, 4>}, {transform_indices = @transform_11, window_bounds = array<i64: 8, 4>}]} {
    %c0 = arith.constant 0 : index
    %c0_0 = arith.constant 0 : index
    %0 = vector.load %arg1[%c0, %c0_0] : memref<8x16xf32, #tpu.memory_space<vmem>>, vector<8x16xf32>
    %c0_1 = arith.constant 0 : index
    %c0_2 = arith.constant 0 : index
    %1 = vector.load %arg3[%c0_1, %c0_2] : memref<16x64xf32, #tpu.memory_space<vmem>>, vector<16x64xf32>
    %cst = arith.constant dense<0.000000e+00> : vector<8x64xf32>
    %2 = tpu.matmul %0, %1, %cst {dimension_numbers = #tpu.dot_dimension_numbers<[1], [0], [0], [1], [0, 0, 1, 1], [], []>} : vector<8x16xf32>, vector<16x64xf32>, vector<8x64xf32> -> vector<8x64xf32>
    %c0_3 = arith.constant 0 : index
    %c0_4 = arith.constant 0 : index
    %3 = vector.load %arg2[%c0_3, %c0_4] : memref<8x4xf32, #tpu.memory_space<vmem>>, vector<8x4xf32>
    %c0_5 = arith.constant 0 : index
    %c0_6 = arith.constant 0 : index
    %4 = vector.load %arg4[%c0_5, %c0_6] : memref<4x64xf32, #tpu.memory_space<vmem>>, vector<4x64xf32>
    %cst_7 = arith.constant dense<0.000000e+00> : vector<8x64xf32>
    %5 = tpu.matmul %3, %4, %cst_7 {dimension_numbers = #tpu.dot_dimension_numbers<[1], [0], [0], [1], [0, 0, 1, 1], [], []>} : vector<8x4xf32>, vector<4x64xf32>, vector<8x64xf32> -> vector<8x64xf32>
    %6 = arith.addf %2, %5 : vector<8x64xf32>
    %c0_8 = arith.constant 0 : index
    %c0_9 = arith.constant 0 : index
    %7 = vector.load %arg5[%c0_8, %c0_9] : memref<1x64xf32, #tpu.memory_space<vmem>>, vector<1x64xf32>
    %8 = vector.broadcast %7 : vector<1x64xf32> to vector<8x64xf32>
    %9 = arith.addf %6, %8 : vector<8x64xf32>
    %cst_10 = arith.constant 0.000000e+00 : f32
    %10 = vector.broadcast %cst_10 : f32 to vector<8x64xf32>
    %11 = arith.maximumf %9, %10 : vector<8x64xf32>
    %c0_11 = arith.constant 0 : index
    %c0_12 = arith.constant 0 : index
    %12 = vector.load %arg6[%c0_11, %c0_12] : memref<64x64xf32, #tpu.memory_space<vmem>>, vector<64x64xf32>
    %cst_13 = arith.constant dense<0.000000e+00> : vector<8x64xf32>
    %13 = tpu.matmul %11, %12, %cst_13 {dimension_numbers = #tpu.dot_dimension_numbers<[1], [0], [0], [1], [0, 0, 1, 1], [], []>} : vector<8x64xf32>, vector<64x64xf32>, vector<8x64xf32> -> vector<8x64xf32>
    %c0_14 = arith.constant 0 : index
    %c0_15 = arith.constant 0 : index
    %14 = vector.load %arg7[%c0_14, %c0_15] : memref<1x64xf32, #tpu.memory_space<vmem>>, vector<1x64xf32>
    %15 = vector.broadcast %14 : vector<1x64xf32> to vector<8x64xf32>
    %16 = arith.addf %13, %15 : vector<8x64xf32>
    %cst_16 = arith.constant 0.000000e+00 : f32
    %17 = vector.broadcast %cst_16 : f32 to vector<8x64xf32>
    %18 = arith.maximumf %16, %17 : vector<8x64xf32>
    %c0_17 = arith.constant 0 : index
    %c0_18 = arith.constant 0 : index
    %19 = vector.load %arg8[%c0_17, %c0_18] : memref<64x64xf32, #tpu.memory_space<vmem>>, vector<64x64xf32>
    %cst_19 = arith.constant dense<0.000000e+00> : vector<8x64xf32>
    %20 = tpu.matmul %18, %19, %cst_19 {dimension_numbers = #tpu.dot_dimension_numbers<[1], [0], [0], [1], [0, 0, 1, 1], [], []>} : vector<8x64xf32>, vector<64x64xf32>, vector<8x64xf32> -> vector<8x64xf32>
    %c0_20 = arith.constant 0 : index
    %c0_21 = arith.constant 0 : index
    %21 = vector.load %arg9[%c0_20, %c0_21] : memref<1x64xf32, #tpu.memory_space<vmem>>, vector<1x64xf32>
    %22 = vector.broadcast %21 : vector<1x64xf32> to vector<8x64xf32>
    %23 = arith.addf %20, %22 : vector<8x64xf32>
    %cst_22 = arith.constant 0.000000e+00 : f32
    %24 = vector.broadcast %cst_22 : f32 to vector<8x64xf32>
    %25 = arith.maximumf %23, %24 : vector<8x64xf32>
    %c0_23 = arith.constant 0 : index
    %c0_24 = arith.constant 0 : index
    %26 = vector.load %arg10[%c0_23, %c0_24] : memref<64x4xf32, #tpu.memory_space<vmem>>, vector<64x4xf32>
    %cst_25 = arith.constant dense<0.000000e+00> : vector<8x4xf32>
    %27 = tpu.matmul %25, %26, %cst_25 {dimension_numbers = #tpu.dot_dimension_numbers<[1], [0], [0], [1], [0, 0, 1, 1], [], []>} : vector<8x64xf32>, vector<64x4xf32>, vector<8x4xf32> -> vector<8x4xf32>
    %c0_26 = arith.constant 0 : index
    %c0_27 = arith.constant 0 : index
    %28 = vector.load %arg11[%c0_26, %c0_27] : memref<1x4xf32, #tpu.memory_space<vmem>>, vector<1x4xf32>
    %29 = vector.broadcast %28 : vector<1x4xf32> to vector<8x4xf32>
    %30 = arith.addf %27, %29 : vector<8x4xf32>
    %c0_28 = arith.constant 0 : index
    %c0_29 = arith.constant 0 : index
    %31 = vector.load %arg12[%c0_28, %c0_29] : memref<8x4xf32, #tpu.memory_space<vmem>>, vector<8x4xf32>
    tpu.vector_store %arg12[%c0_28, %c0_29], %30 {strides = array<i32>} : memref<8x4xf32, #tpu.memory_space<vmem>>, vector<8x4xf32>,
    return
  }
  func.func @transform_0(%arg0: i32) -> (i32, i32) {
    %c0_i32 = arith.constant 0 : i32
    %c0_i32_0 = arith.constant 0 : i32
    return %arg0, %c0_i32 : i32, i32
  }
  func.func @transform_1(%arg0: i32) -> (i32, i32) {
    %c0_i32 = arith.constant 0 : i32
    %c0_i32_0 = arith.constant 0 : i32
    return %arg0, %c0_i32 : i32, i32
  }
  func.func @transform_2(%arg0: i32) -> (i32, i32) {
    %c0_i32 = arith.constant 0 : i32
    %c0_i32_0 = arith.constant 0 : i32
    %c0_i32_1 = arith.constant 0 : i32
    return %c0_i32, %c0_i32_0 : i32, i32
  }
  func.func @transform_3(%arg0: i32) -> (i32, i32) {
    %c0_i32 = arith.constant 0 : i32
    %c0_i32_0 = arith.constant 0 : i32
    %c0_i32_1 = arith.constant 0 : i32
    return %c0_i32, %c0_i32_0 : i32, i32
  }
  func.func @transform_4(%arg0: i32) -> (i32, i32) {
    %c0_i32 = arith.constant 0 : i32
    %c0_i32_0 = arith.constant 0 : i32
    %c0_i32_1 = arith.constant 0 : i32
    return %c0_i32, %c0_i32_0 : i32, i32
  }
  func.func @transform_5(%arg0: i32) -> (i32, i32) {
    %c0_i32 = arith.constant 0 : i32
    %c0_i32_0 = arith.constant 0 : i32
    %c0_i32_1 = arith.constant 0 : i32
    return %c0_i32, %c0_i32_0 : i32, i32
  }
  func.func @transform_6(%arg0: i32) -> (i32, i32) {
    %c0_i32 = arith.constant 0 : i32
    %c0_i32_0 = arith.constant 0 : i32
    %c0_i32_1 = arith.constant 0 : i32
    return %c0_i32, %c0_i32_0 : i32, i32
  }
  func.func @transform_7(%arg0: i32) -> (i32, i32) {
    %c0_i32 = arith.constant 0 : i32
    %c0_i32_0 = arith.constant 0 : i32
    %c0_i32_1 = arith.constant 0 : i32
    return %c0_i32, %c0_i32_0 : i32, i32
  }
  func.func @transform_8(%arg0: i32) -> (i32, i32) {
    %c0_i32 = arith.constant 0 : i32
    %c0_i32_0 = arith.constant 0 : i32
    %c0_i32_1 = arith.constant 0 : i32
    return %c0_i32, %c0_i32_0 : i32, i32
  }
  func.func @transform_9(%arg0: i32) -> (i32, i32) {
    %c0_i32 = arith.constant 0 : i32
    %c0_i32_0 = arith.constant 0 : i32
    %c0_i32_1 = arith.constant 0 : i32
    return %c0_i32, %c0_i32_0 : i32, i32
  }
  func.func @transform_10(%arg0: i32) -> (i32, i32) {
    %c0_i32 = arith.constant 0 : i32
    %c0_i32_0 = arith.constant 0 : i32
    %c0_i32_1 = arith.constant 0 : i32
    return %c0_i32, %c0_i32_0 : i32, i32
  }
  func.func @transform_11(%arg0: i32) -> (i32, i32) {
    %c0_i32 = arith.constant 0 : i32
    %c0_i32_0 = arith.constant 0 : i32
    return %arg0, %c0_i32 : i32, i32
  }
}

</mosaic_0001>

<bundles_post_ra>
// kernel: critic_forward.1
= control target key start
LH: loop header
LB: loop body
LE: loop exit
PB: predicated region body
PF: predicated region fallthrough
CT: control target
= control target key end

     0   :  { %16 = vsyncpa [#allocation3], 0  ;;  %s270_s20 = smov [#allocation2]   ;;  %s271_s22 = smov 128   ;;  %s419_s0 = inlined_call_operand.vmem [shape: f32[8,16], index: 0, kind: input, shape index: {}]   ;;  %s420_s1 = inlined_call_operand.vmem [shape: f32[8,4], index: 1, kind: input, shape index: {}]   ;;  %s421_s2 = inlined_call_operand.vmem [shape: f32[16,64], index: 2, kind: input, shape index: {}]   ;;  %s422_s3 = inlined_call_operand.vmem [shape: f32[4,64], index: 3, kind: input, shape index: {}]   ;;  %s423_s4 = inlined_call_operand.vmem [shape: f32[1,64], index: 4, kind: input, shape index: {}]   ;;  %s424_s5 = inlined_call_operand.vmem [shape: f32[64,64], index: 5, kind: input, shape index: {}]   ;;  %s425_s6 = inlined_call_operand.vmem [shape: f32[1,64], index: 6, kind: input, shape index: {}]   ;;  %s426_s7 = inlined_call_operand.hbm [shape: f32[64,64], index: 7, kind: input, shape index: {}]   ;;  %s427_s8 = inlined_call_operand.vmem [shape: f32[1,64], index: 8, kind: input, shape index: {}]   ;;  %s428_s9 = inlined_call_operand.vmem [shape: f32[64,4], index: 9, kind: input, shape index: {}]   ;;  %s429_s10 = inlined_call_operand.vmem [shape: f32[1,4], index: 10, kind: input, shape index: {}]   ;;  %s430_s11 = inlined_call_operand.vmem [shape: f32[8,4], index: 11, kind: output, shape index: {}]  }
   0x1   :  { %s35_s19 = sshll.u32 %s426_s7, 4  ;;  %s37_s21 = sshll.u32 %s270_s20, 4  ;;  %s36_s19 = int_to_ptr.hbm [resolvable:$true] %s35_s19  ;;  %s38_s21 = int_to_ptr.vmem [resolvable:$true] %s37_s21 }
   0x2   :  { %s272_s23 = smov 8  }
   0x3   :  { %43 = dma.hbm_to_vmem [thread:$0]  %s36_s19, 1024, %s38_s21, [#allocation3], %s271_s22, %s271_s22, %s272_s23  }
   0x4   :  { %268 = dma.done.wait [#allocation3], 1024  }
   0x5   :  { %269 = vsyncadd [#allocation3], 4294966272  ;;  %vm63_vm0 = vcmask 1043456   ;;  %vm59_vm1 = vcmask 31744   ;;  %v58_v0 = vld [vmem:[%s422_s3] sm:$0xf] }
   0x6   :  { %v57_v1 = vld [vmem:[%s420_s1] sm:$0xff]  ;;  %v56_v2 = vld [vmem:[%s421_s2 + $0x8] sm:$0xff]  ;;  %231 = vmatpush.msk.msra.mxu1 %vm63_vm0, %v58_v0  ;;  %vm87_vm2 = vcmask 130048   ;;  %v124_v5 = vld [vmem:[%s424_s5 + $0x38] sm:$0xff]  ;;  %vm129_vm3 = vcmask 523264  }
   0x7   :  { %v55_v3 = vld [vmem:[%s421_s2] sm:$0xff]  ;;  %232 = vmatmul.msk.f32.vlgmr.msra.gmra.mxu1 %vm59_vm1, %v57_v1  ;;  %141 = vmatpush.msra.mxu2 %v124_v5  ;;  %v123_v6 = vld [vmem:[%s424_s5 + $0x30] sm:$0xff]  ;;  %v122_v7 = vld [vmem:[%s424_s5 + $0x28] sm:$0xff] }
   0x8   :  { %105 = vmatpush.msrb.mxu1 %v56_v2  ;;  %v54_v4 = vld [vmem:[%s419_s0] sm:$0xff]  ;;  %v120_v9 = vld [vmem:[%s424_s5 + $0x18] sm:$0xff]  ;;  %v119_v10 = vld [vmem:[%s424_s5 + $0x10] sm:$0xff] }
   0x9   :  { %142 = vmatpush.msra.mxu2 %v123_v6  ;;  %v121_v8 = vld [vmem:[%s424_s5 + $0x20] sm:$0xff]  ;;  %v118_v11 = vld [vmem:[%s424_s5 + $0x8] sm:$0xff]  ;;  %v161_v13 = vld [vmem:[#allocation2 + $0x38] sm:$0xff] }
   0xa   :  { %106 = vmatpush.msrb.mxu1 %v55_v3  ;;  %v117_v12 = vld [vmem:[%s424_s5] sm:$0xff]  ;;  %v160_v14 = vld [vmem:[#allocation2 + $0x30] sm:$0xff]  ;;  %177 = vmatpush.msra.mxu3 %v161_v13  ;;  %v159_v15 = vld [vmem:[#allocation2 + $0x28] sm:$0xff] }
   0xb   :  { %143 = vmatpush.msra.mxu2 %v122_v7  ;;  %v158_v16 = vld [vmem:[#allocation2 + $0x20] sm:$0xff]  ;;  %v157_v17 = vld [vmem:[#allocation2 + $0x18] sm:$0xff]  ;;  %v156_v24 = vld [vmem:[#allocation2 + $0x10] sm:$0xff] }
   0xc   :  { %178 = vmatpush.msra.mxu3 %v160_v14  ;;  %v240_v19 = vld [vmem:[%s423_s4] ss:$0 sm:$0xff]  ;;  %v155_v25 = vld [vmem:[#allocation2 + $0x8] sm:$0xff]  ;;  %v197_v27 = vld [vmem:[%s428_s9 + $0x38] sm:$0xff] }
   0xd   :  { %144 = vmatpush.msra.mxu2 %v121_v8  ;;  %v154_v26 = vld [vmem:[#allocation2] sm:$0xff]  ;;  %v196_v28 = vld [vmem:[%s428_s9 + $0x30] sm:$0xff]  ;;  %213 = vmatpush.msra.mxu0 %v197_v27  ;;  %v195_v29 = vld [vmem:[%s428_s9 + $0x28] sm:$0xff] }
   0xe   :  { %179 = vmatpush.msra.mxu3 %v159_v15  ;;  %v194_v30 = vld [vmem:[%s428_s9 + $0x20] sm:$0xff]  ;;  %v193_v31 = vld [vmem:[%s428_s9 + $0x18] sm:$0xff]  ;;  %v192_v36 = vld [vmem:[%s428_s9 + $0x10] sm:$0xff] }
   0xf   :  { %233 = vmatmul.msk.f32.vlgmr.msrb.gmra.mxu1 %vm87_vm2, %v54_v4  ;;  %145 = vmatpush.msra.mxu2 %v120_v9  ;;  %v241_v32 = vld [vmem:[%s425_s6] ss:$0 sm:$0xff]  ;;  %v191_v37 = vld [vmem:[%s428_s9 + $0x8] sm:$0xff] }
  0x10   :  { %180 = vmatpush.msra.mxu3 %v158_v16  ;;  %214 = vmatpush.msra.mxu0 %v196_v28  ;;  %v190_v38 = vld [vmem:[%s428_s9] sm:$0xff] }
  0x11   :  { %146 = vmatpush.msra.mxu2 %v119_v10  ;;  %v242_v39 = vld [vmem:[%s427_s8] ss:$0 sm:$0xff] }
  0x12   :  { %181 = vmatpush.msra.mxu3 %v157_v17  ;;  %215 = vmatpush.msra.mxu0 %v195_v29  ;;  %v243_v43 = vld [vmem:[%s429_s10] ss:$0 sm:$0xff] }
  0x13   :  { %147 = vmatpush.msra.mxu2 %v118_v11 }
  0x14   :  { %182 = vmatpush.msra.mxu3 %v156_v24  ;;  %216 = vmatpush.msra.mxu0 %v194_v30 }
  0x15   :  { %148 = vmatpush.msra.mxu2 %v117_v12 }
  0x16   :  { %183 = vmatpush.msra.mxu3 %v155_v25  ;;  %217 = vmatpush.msra.mxu0 %v193_v31 }
  0x18   :  { %184 = vmatpush.msra.mxu3 %v154_v26  ;;  %218 = vmatpush.msra.mxu0 %v192_v36 }
  0x1a   :  { %219 = vmatpush.msra.mxu0 %v191_v37 }
  0x1c   :  { %220 = vmatpush.msra.mxu0 %v190_v38 }
  0x84   :  { %v84_v18 = vpop.f32.mrf.mxu1 }
  0x8c   :  { %v108_v20 = vpop.f32.mrf.mxu1 }
  0x8d   :  { %v109_v21 = vadd.f32 %v108_v20, %v84_v18 }
  0x8f   :  { %v115_v22 = vadd.f32 %v240_v19, %v109_v21 }
  0x91   :  { %v116_v23 = vmax.f32 %v115_v22, 0.0 }
  0x93   :  { %234 = vmatmul.msk.f32.vlgmr.msra.gmra.mxu2 %vm129_vm3, %v116_v23 }
 0x116   :  { %v150_v33 = vpop.f32.mrf.mxu2 }
 0x117   :  { %v151_v34 = vadd.f32 %v241_v32, %v150_v33 }
 0x119   :  { %v153_v35 = vmax.f32 %v151_v34, 0.0 }
 0x11b   :  { %235 = vmatmul.msk.f32.vlgmr.msra.gmra.mxu3 %vm129_vm3, %v153_v35 }
 0x19e   :  { %v186_v40 = vpop.f32.mrf.mxu3 }
 0x19f   :  { %v187_v41 = vadd.f32 %v242_v39, %v186_v40 }
 0x1a1   :  { %v189_v42 = vmax.f32 %v187_v41, 0.0 }
 0x1a3   :  { %236 = vmatmul.msk.f32.vlgmr.msra.gmra.mxu0 %vm129_vm3, %v189_v42 }
 0x220   :  { %v222_v44 = vpop.f32.mrf.mxu0 }
 0x221   :  { %v223_v45 = vadd.f32 %v243_v43, %v222_v44 }
 0x223   :  { %225 = vst.msk [vmem:[%s430_s11] sm:$0xff] %vm59_vm1, %v223_v45 }
 0x224   :  { %230 = vsyncpa [#allocation3], 1 }

</bundles_post_ra>
